<compile_context>
chip_gen: v5e
topology: v5e:2x2
jax: 0.10.0
libtpu: 0.0.40
codegen_flags: <defaults>
</compile_context>

<pallas_src>
import math
import numpy as np
import jax
import jax.numpy as jnp
from jax.experimental import pallas as pl
from jax.experimental.pallas import tpu as pltpu


# ----------------------------- mask construction -----------------------------
def _get_out_degree(dim_s, dim_next):
    # next_layer == 'hidden', random_mask == False
    n = math.ceil(dim_next / dim_s)
    out_degree = np.tile(np.arange(dim_s), n)
    return out_degree[:dim_next]


def make_hidden_mask(dim_s, in_degree, dim_out):
    out_degree = _get_out_degree(dim_s, dim_out)
    mask = (out_degree[:, None] >= in_degree[None, :]).astype(np.float32)
    return mask, out_degree


# --------------------------------- kernel ------------------------------------
def masked_residual_block_kernel(x_ref, w0_ref, b0_ref, w1_ref, b1_ref, o_ref):
    x = x_ref[...]                                            # [tr, 128]
    # residual = activation(inputs)
    h = jnp.maximum(x, 0.0)
    # residual = linear_0(residual); weight pre-masked, pre-transposed,
    # block-diagonal packed to [128, 128]
    h = jnp.dot(h, w0_ref[...], preferred_element_type=jnp.float32) + b0_ref[...]
    # residual = activation(residual); dropout(p=0) is identity
    h = jnp.maximum(h, 0.0)
    # residual = linear_1(residual)
    h = jnp.dot(h, w1_ref[...], preferred_element_type=jnp.float32) + b1_ref[...]
    # return inputs + residual
    o_ref[...] = (x + h).astype(o_ref.dtype)


def masked_residual_block(x, w0, mask0, b0, w1, mask1, b1, *, block_rows=2048):
    """Fused MaskedResidualBlock forward.

    x           : [B, D] activations
    w0, w1      : [D, D] torch-layout weights (out_features, in_features)
    mask0, mask1: [D, D] static autoregressive masks
    b0, b1      : [1, D] biases
    block_rows  : batch tile size in *packed* rows (each packed row = P inputs)
    """
    B, D = x.shape
    orig_dtype = x.dtype

    # Lane-packing factor: fold P rows of width D into one 128-wide lane row.
    if D < 128 and 128 % D == 0:
        P = 128 // D
    else:
        P = 1                      # D already lane-dense (or not evenly packable)
    Dp = P * D

    # Static preprocessing (done once per jitted call): apply mask, transpose,
    # and pack P copies onto the diagonal of a [Dp, Dp] matrix. Off-diagonal
    # entries are exact zeros, so packed results are bit-identical.
    w0t = (w0 * mask0).T.astype(jnp.float32)     # [D_in, D_out]
    w1t = (w1 * mask1).T.astype(jnp.float32)
    if P > 1:
        eye = jnp.eye(P, dtype=jnp.float32)
        w0p = jnp.kron(eye, w0t)                 # [Dp, Dp] block-diagonal
        w1p = jnp.kron(eye, w1t)
        b0p = jnp.tile(b0.reshape(1, D), (1, P)) # [1, Dp]
        b1p = jnp.tile(b1.reshape(1, D), (1, P))
    else:
        w0p, w1p = w0t, w1t
        b0p, b1p = b0.reshape(1, D), b1.reshape(1, D)

    # Pad batch to a multiple of P (pad rows are sliced off afterwards), then
    # view [B_pad, D] as [B_pad//P, Dp] — a free row-major reshape, no copy.
    B_pad = pl.cdiv(B, P) * P
    xf = x.astype(jnp.float32)
    if B_pad != B:
        xf = jnp.pad(xf, ((0, B_pad - B), (0, 0)))
    Rp = B_pad // P
    xp = xf.reshape(Rp, Dp)

    # Packed-row tile: full array if small, else a multiple-of-8 slab.
    if Rp <= block_rows:
        tr = Rp
    else:
        tr = max(8, (block_rows // 8) * 8)
    grid = (pl.cdiv(Rp, tr),)

    # VMEM budget: double-buffered x-in + out streams, resident weights/biases,
    # plus ~1 MiB slack. Capped at 64 MiB so it also fits v7x.
    tile_bytes = tr * Dp * 4
    vmem_bytes = 4 * tile_bytes + 2 * Dp * Dp * 4 + 2 * Dp * 4 + (1 << 20)
    vmem_bytes = int(min(max(vmem_bytes, 4 << 20), 64 << 20))

    resident = lambda shape: pl.BlockSpec(shape, lambda i: (0, 0))

    out = pl.pallas_call(
        masked_residual_block_kernel,
        out_shape=jax.ShapeDtypeStruct((Rp, Dp), jnp.float32),
        grid=grid,
        in_specs=[
            pl.BlockSpec((tr, Dp), lambda i: (i, 0)),   # x: tiled over packed rows
            resident((Dp, Dp)),                         # packed (w0*mask0).T resident
            resident((1, Dp)),                          # packed b0 resident
            resident((Dp, Dp)),                         # packed (w1*mask1).T resident
            resident((1, Dp)),                          # packed b1 resident
        ],
        out_specs=pl.BlockSpec((tr, Dp), lambda i: (i, 0)),
        compiler_params=pltpu.CompilerParams(
            dimension_semantics=("parallel",),
            vmem_limit_bytes=vmem_bytes,
        ),
    )(xp, w0p, b0p, w1p, b1p)

    out = out.reshape(B_pad, D)
    if B_pad != B:
        out = out[:B]
    return out.astype(orig_dtype)


# ------------------------------ reference (JAX) -------------------------------
def reference_forward(x, w0, mask0, b0, w1, mask1, b1):
    h = jnp.maximum(x, 0.0)
    h = h @ (w0 * mask0).T + b0[0]
    h = jnp.maximum(h, 0.0)
    h = h @ (w1 * mask1).T + b1[0]
    return x + h


# ----------------------------------- main -------------------------------------
if __name__ == "__main__":
    dim_s = 4          # dimension of the state
    dim = 32           # hidden width (= len(in_degree))
    batch = 8

    # in_degree for the block: typical hidden-layer degrees
    in_degree = _get_out_degree(dim_s, dim)                       # [dim]

    # linear_0 mask / out_degree, linear_1 mask
    mask0_np, out_deg0 = make_hidden_mask(dim_s, in_degree, dim)  # [dim, dim]
    mask1_np, _ = make_hidden_mask(dim_s, out_deg0, dim)          # [dim, dim]

    # Deterministic parameter init (nn.Linear default: U(-1/sqrt(fan_in), +))
    key = jax.random.PRNGKey(0)
    k_w0, k_b0, k_w1, k_b1, k_x, k_x2 = jax.random.split(key, 6)
    bound = 1.0 / math.sqrt(dim)
    w0 = jax.random.uniform(k_w0, (dim, dim), jnp.float32, -bound, bound)
    b0 = jax.random.uniform(k_b0, (1, dim), jnp.float32, -bound, bound)
    w1 = jax.random.uniform(k_w1, (dim, dim), jnp.float32, -bound, bound)
    b1 = jax.random.uniform(k_b1, (1, dim), jnp.float32, -bound, bound)

    mask0 = jnp.asarray(mask0_np)
    mask1 = jnp.asarray(mask1_np)

    # jit the wrapper so the mask-apply / block-diagonal packing is done once
    # per call (and constant-folds when weights are literals).
    fwd = jax.jit(masked_residual_block)

    # Test 1: batch divisible by the packing factor.
    x = jax.random.normal(k_x, (batch, dim), jnp.float32)
    out = jax.block_until_ready(fwd(x, w0, mask0, b0, w1, mask1, b1))
    ref = reference_forward(x, w0, mask0, b0, w1, mask1, b1)
    np.testing.assert_allclose(np.asarray(out), np.asarray(ref),
                               rtol=1e-5, atol=1e-5)

    # Test 2: batch NOT divisible by the packing factor (exercises pad + slice).
    x2 = jax.random.normal(k_x2, (batch + 2, dim), jnp.float32)
    out2 = jax.block_until_ready(fwd(x2, w0, mask0, b0, w1, mask1, b1))
    ref2 = reference_forward(x2, w0, mask0, b0, w1, mask1, b1)
    np.testing.assert_allclose(np.asarray(out2), np.asarray(ref2),
                               rtol=1e-5, atol=1e-5)

    print("KERNEL_OK")
</pallas_src>

<mosaic_0001>
module attributes {stable_mosaic.version = 11 : i64} {
  func.func @masked_residual_block_kernel(%arg0: i32, %arg1: memref<2x128xf32, #tpu.memory_space<vmem>>, %arg2: memref<128x128xf32, #tpu.memory_space<vmem>>, %arg3: memref<1x128xf32, #tpu.memory_space<vmem>>, %arg4: memref<128x128xf32, #tpu.memory_space<vmem>>, %arg5: memref<1x128xf32, #tpu.memory_space<vmem>>, %arg6: memref<2x128xf32, #tpu.memory_space<vmem>>) attributes {dimension_semantics = [#tpu.dimension_semantics<parallel>], iteration_bounds = array<i64: 1>, scalar_prefetch = 0 : i64, scratch_operands = 0 : i64, tpu.core_type = #tpu.core_type<tc>, window_params = [{transform_indices = @transform_0, window_bounds = array<i64: 2, 128>}, {pipeline_mode = #tpu.pipeline_mode<synchronous>, transform_indices = @transform_1, window_bounds = array<i64: 128, 128>}, {pipeline_mode = #tpu.pipeline_mode<synchronous>, transform_indices = @transform_2, window_bounds = array<i64: 1, 128>}, {pipeline_mode = #tpu.pipeline_mode<synchronous>, transform_indices = @transform_3, window_bounds = array<i64: 128, 128>}, {pipeline_mode = #tpu.pipeline_mode<synchronous>, transform_indices = @transform_4, window_bounds = array<i64: 1, 128>}, {transform_indices = @transform_5, window_bounds = array<i64: 2, 128>}]} {
    %c0 = arith.constant 0 : index
    %c0_0 = arith.constant 0 : index
    %0 = vector.load %arg1[%c0, %c0_0] : memref<2x128xf32, #tpu.memory_space<vmem>>, vector<2x128xf32>
    %cst = arith.constant 0.000000e+00 : f32
    %1 = vector.broadcast %cst : f32 to vector<2x128xf32>
    %2 = arith.maximumf %0, %1 : vector<2x128xf32>
    %c0_1 = arith.constant 0 : index
    %c0_2 = arith.constant 0 : index
    %3 = vector.load %arg2[%c0_1, %c0_2] : memref<128x128xf32, #tpu.memory_space<vmem>>, vector<128x128xf32>
    %cst_3 = arith.constant dense<0.000000e+00> : vector<2x128xf32>
    %4 = tpu.matmul %2, %3, %cst_3 {dimension_numbers = #tpu.dot_dimension_numbers<[1], [0], [0], [1], [0, 0, 1, 1], [], []>} : vector<2x128xf32>, vector<128x128xf32>, vector<2x128xf32> -> vector<2x128xf32>
    %c0_4 = arith.constant 0 : index
    %c0_5 = arith.constant 0 : index
    %5 = vector.load %arg3[%c0_4, %c0_5] : memref<1x128xf32, #tpu.memory_space<vmem>>, vector<1x128xf32>
    %6 = vector.broadcast %5 : vector<1x128xf32> to vector<2x128xf32>
    %7 = arith.addf %4, %6 : vector<2x128xf32>
    %cst_6 = arith.constant 0.000000e+00 : f32
    %8 = vector.broadcast %cst_6 : f32 to vector<2x128xf32>
    %9 = arith.maximumf %7, %8 : vector<2x128xf32>
    %c0_7 = arith.constant 0 : index
    %c0_8 = arith.constant 0 : index
    %10 = vector.load %arg4[%c0_7, %c0_8] : memref<128x128xf32, #tpu.memory_space<vmem>>, vector<128x128xf32>
    %cst_9 = arith.constant dense<0.000000e+00> : vector<2x128xf32>
    %11 = tpu.matmul %9, %10, %cst_9 {dimension_numbers = #tpu.dot_dimension_numbers<[1], [0], [0], [1], [0, 0, 1, 1], [], []>} : vector<2x128xf32>, vector<128x128xf32>, vector<2x128xf32> -> vector<2x128xf32>
    %c0_10 = arith.constant 0 : index
    %c0_11 = arith.constant 0 : index
    %12 = vector.load %arg5[%c0_10, %c0_11] : memref<1x128xf32, #tpu.memory_space<vmem>>, vector<1x128xf32>
    %13 = vector.broadcast %12 : vector<1x128xf32> to vector<2x128xf32>
    %14 = arith.addf %11, %13 : vector<2x128xf32>
    %15 = arith.addf %0, %14 : vector<2x128xf32>
    %c0_12 = arith.constant 0 : index
    %c0_13 = arith.constant 0 : index
    %16 = vector.load %arg6[%c0_12, %c0_13] : memref<2x128xf32, #tpu.memory_space<vmem>>, vector<2x128xf32>
    tpu.vector_store %arg6[%c0_12, %c0_13], %15 {strides = array<i32>} : memref<2x128xf32, #tpu.memory_space<vmem>>, vector<2x128xf32>,
    return
  }
  func.func @transform_0(%arg0: i32) -> (i32, i32) {
    %c0_i32 = arith.constant 0 : i32
    %c0_i32_0 = arith.constant 0 : i32
    return %arg0, %c0_i32 : i32, i32
  }
  func.func @transform_1(%arg0: i32) -> (i32, i32) {
    %c0_i32 = arith.constant 0 : i32
    %c0_i32_0 = arith.constant 0 : i32
    %c0_i32_1 = arith.constant 0 : i32
    return %c0_i32, %c0_i32_0 : i32, i32
  }
  func.func @transform_2(%arg0: i32) -> (i32, i32) {
    %c0_i32 = arith.constant 0 : i32
    %c0_i32_0 = arith.constant 0 : i32
    %c0_i32_1 = arith.constant 0 : i32
    return %c0_i32, %c0_i32_0 : i32, i32
  }
  func.func @transform_3(%arg0: i32) -> (i32, i32) {
    %c0_i32 = arith.constant 0 : i32
    %c0_i32_0 = arith.constant 0 : i32
    %c0_i32_1 = arith.constant 0 : i32
    return %c0_i32, %c0_i32_0 : i32, i32
  }
  func.func @transform_4(%arg0: i32) -> (i32, i32) {
    %c0_i32 = arith.constant 0 : i32
    %c0_i32_0 = arith.constant 0 : i32
    %c0_i32_1 = arith.constant 0 : i32
    return %c0_i32, %c0_i32_0 : i32, i32
  }
  func.func @transform_5(%arg0: i32) -> (i32, i32) {
    %c0_i32 = arith.constant 0 : i32
    %c0_i32_0 = arith.constant 0 : i32
    return %arg0, %c0_i32 : i32, i32
  }
}

</mosaic_0001>

<bundles_post_ra>
// kernel: masked_residual_block.1
= control target key start
LH: loop header
LB: loop body
LE: loop exit
PB: predicated region body
PF: predicated region fallthrough
CT: control target
= control target key end

     0   :  { %s249_s1 = inlined_call_operand.vmem [shape: f32[128,128], index: 1, kind: input, shape index: {}]   ;;  %s250_s3 = inlined_call_operand.vmem [shape: f32[128,128], index: 3, kind: input, shape index: {}]   ;;  %s251_s2 = inlined_call_operand.vmem [shape: f32[1,128], index: 2, kind: input, shape index: {}]   ;;  %s252_s0 = inlined_call_operand.vmem [shape: f32[2,128], index: 0, kind: input, shape index: {}]   ;;  %s253_s4 = inlined_call_operand.vmem [shape: f32[1,128], index: 4, kind: input, shape index: {}]   ;;  %s254_s5 = inlined_call_operand.vmem [shape: f32[2,128], index: 5, kind: output, shape index: {}]  }
   0x1   :  { %v37_v0 = vld [vmem:[%s249_s1 + $0x78] sm:$0xff]  ;;  %v36_v1 = vld [vmem:[%s249_s1 + $0x70] sm:$0xff]  ;;  %v35_v2 = vld [vmem:[%s249_s1 + $0x68] sm:$0xff] }
   0x2   :  { %42 = vmatpush.msra.mxu0 %v37_v0  ;;  %v34_v3 = vld [vmem:[%s249_s1 + $0x60] sm:$0xff]  ;;  %v78_v4 = vld [vmem:[%s250_s3 + $0x78] sm:$0xff]  ;;  %v77_v6 = vld [vmem:[%s250_s3 + $0x70] sm:$0xff] }
   0x3   :  { %v33_v5 = vld [vmem:[%s249_s1 + $0x58] sm:$0xff]  ;;  %83 = vmatpush.msra.mxu1 %v78_v4  ;;  %v76_v7 = vld [vmem:[%s250_s3 + $0x68] sm:$0xff]  ;;  %v32_v8 = vld [vmem:[%s249_s1 + $0x50] sm:$0xff] }
   0x4   :  { %43 = vmatpush.msra.mxu0 %v36_v1  ;;  %v75_v9 = vld [vmem:[%s250_s3 + $0x60] sm:$0xff]  ;;  %v31_v10 = vld [vmem:[%s249_s1 + $0x48] sm:$0xff]  ;;  %v74_v11 = vld [vmem:[%s250_s3 + $0x58] sm:$0xff] }
   0x5   :  { %84 = vmatpush.msra.mxu1 %v77_v6  ;;  %v30_v12 = vld [vmem:[%s249_s1 + $0x40] sm:$0xff]  ;;  %v73_v13 = vld [vmem:[%s250_s3 + $0x50] sm:$0xff]  ;;  %v29_v14 = vld [vmem:[%s249_s1 + $0x38] sm:$0xff] }
   0x6   :  { %44 = vmatpush.msra.mxu0 %v35_v2  ;;  %v72_v15 = vld [vmem:[%s250_s3 + $0x48] sm:$0xff]  ;;  %v28_v16 = vld [vmem:[%s249_s1 + $0x30] sm:$0xff]  ;;  %v71_v17 = vld [vmem:[%s250_s3 + $0x40] sm:$0xff] }
   0x7   :  { %85 = vmatpush.msra.mxu1 %v76_v7  ;;  %v27_v18 = vld [vmem:[%s249_s1 + $0x28] sm:$0xff]  ;;  %v70_v19 = vld [vmem:[%s250_s3 + $0x38] sm:$0xff]  ;;  %v26_v20 = vld [vmem:[%s249_s1 + $0x20] sm:$0xff] }
   0x8   :  { %45 = vmatpush.msra.mxu0 %v34_v3  ;;  %v69_v21 = vld [vmem:[%s250_s3 + $0x30] sm:$0xff]  ;;  %v25_v22 = vld [vmem:[%s249_s1 + $0x18] sm:$0xff]  ;;  %v68_v23 = vld [vmem:[%s250_s3 + $0x28] sm:$0xff] }
   0x9   :  { %86 = vmatpush.msra.mxu1 %v75_v9  ;;  %v24_v24 = vld [vmem:[%s249_s1 + $0x10] sm:$0xff]  ;;  %v20_v25 = vld [vmem:[%s252_s0] sm:$0x3]  ;;  %v23_v27 = vld [vmem:[%s249_s1 + $0x8] sm:$0xff] }
   0xa   :  { %46 = vmatpush.msra.mxu0 %v33_v5  ;;  %v67_v26 = vld [vmem:[%s250_s3 + $0x20] sm:$0xff]  ;;  %v66_v28 = vld [vmem:[%s250_s3 + $0x18] sm:$0xff]  ;;  %v21_v30 = vmax.f32 %v20_v25, 0.0  ;;  %v65_v31 = vld [vmem:[%s250_s3 + $0x10] sm:$0xff] }
   0xb   :  { %87 = vmatpush.msra.mxu1 %v74_v11  ;;  %v22_v29 = vld [vmem:[%s249_s1] sm:$0xff]  ;;  %v64_v32 = vld [vmem:[%s250_s3 + $0x8] sm:$0xff] }
   0xc   :  { %47 = vmatpush.msra.mxu0 %v32_v8  ;;  %v63_v33 = vld [vmem:[%s250_s3] sm:$0xff] }
   0xd   :  { %88 = vmatpush.msra.mxu1 %v73_v13  ;;  %v109_v34 = vld [vmem:[%s251_s2] ss:$0 sm:$0xff] }
   0xe   :  { %48 = vmatpush.msra.mxu0 %v31_v10  ;;  %v110_v38 = vld [vmem:[%s253_s4] ss:$0 sm:$0xff] }
   0xf   :  { %89 = vmatpush.msra.mxu1 %v72_v15 }
  0x10   :  { %49 = vmatpush.msra.mxu0 %v30_v12 }
  0x11   :  { %90 = vmatpush.msra.mxu1 %v71_v17 }
  0x12   :  { %50 = vmatpush.msra.mxu0 %v29_v14 }
  0x13   :  { %91 = vmatpush.msra.mxu1 %v70_v19 }
  0x14   :  { %51 = vmatpush.msra.mxu0 %v28_v16 }
  0x15   :  { %92 = vmatpush.msra.mxu1 %v69_v21 }
  0x16   :  { %52 = vmatpush.msra.mxu0 %v27_v18 }
  0x17   :  { %93 = vmatpush.msra.mxu1 %v68_v23 }
  0x18   :  { %53 = vmatpush.msra.mxu0 %v26_v20 }
  0x19   :  { %94 = vmatpush.msra.mxu1 %v67_v26 }
  0x1a   :  { %54 = vmatpush.msra.mxu0 %v25_v22 }
  0x1b   :  { %95 = vmatpush.msra.mxu1 %v66_v28 }
  0x1c   :  { %55 = vmatpush.msra.mxu0 %v24_v24 }
  0x1d   :  { %96 = vmatpush.msra.mxu1 %v65_v31 }
  0x1e   :  { %56 = vmatpush.msra.mxu0 %v23_v27 }
  0x1f   :  { %97 = vmatpush.msra.mxu1 %v64_v32 }
  0x20   :  { %57 = vmatpush.msra.mxu0 %v22_v29 }
  0x21   :  { %58 = vmatmul.f32.vlgmr.msra.gmra.mxu0 %v21_v30  ;;  %98 = vmatpush.msra.mxu1 %v63_v33 }
  0x9e   :  { %v59_v35 = vpop.f32.mrf.mxu0 }
  0x9f   :  { %v60_v36 = vadd.f32 %v109_v34, %v59_v35 }
  0xa1   :  { %v62_v37 = vmax.f32 %v60_v36, 0.0 }
  0xa3   :  { %99 = vmatmul.f32.vlgmr.msra.gmra.mxu1 %v62_v37 }
 0x120   :  { %v100_v39 = vpop.f32.mrf.mxu1 }
 0x121   :  { %v101_v40 = vadd.f32 %v110_v38, %v100_v39 }
 0x123   :  { %v103_v41 = vadd.f32 %v101_v40, %v20_v25 }
 0x125   :  { %104 = vst [vmem:[%s254_s5] sm:$0x3] %v103_v41 }

</bundles_post_ra>
